<compile_context>
chip_gen: v7x
topology: tpu7x:2x2x1
jax: 0.10.0
libtpu: 0.0.40
codegen_flags: <defaults>
</compile_context>

<pallas_src>
import functools

import jax
import jax.numpy as jnp
from jax.experimental import pallas as pl
from jax.experimental.pallas import tpu as pltpu


# ---------------------------------------------------------------------------
# Kernels
# ---------------------------------------------------------------------------

def _rmsnorm_kernel(x_ref, w_ref, o_ref, *, eps):
    """General path: tile = (row_tile, hidden); reduce over the last axis."""
    x32 = x_ref[...].astype(jnp.float32)                  # .to(torch.float32)
    var = jnp.mean(x32 * x32, axis=-1, keepdims=True)     # pow(2).mean(-1)
    normed = x32 * jax.lax.rsqrt(var + eps)               # x * rsqrt(var + eps)
    if x_ref.dtype != jnp.float32:
        normed = normed.astype(x_ref.dtype)                # .to(input_dtype)
    out = w_ref[...] * normed                               # promotes like torch
    o_ref[...] = out.astype(o_ref.dtype)


def _rmsnorm_packed_kernel(x_ref, w_ref, o_ref, *, eps, hidden, lane):
    """Small-hidden lane-dense path.

    k = lane // hidden original rows are packed side by side along the
    128-lane axis, so loads/stores are full lane width (no masked vst.msk).
    The segmented (per original row) sum of squares is computed with one tiny
    f32 MXU matmul against a block-diagonal 0/1 matrix built from iota - this
    avoids in-kernel reshapes / cross-lane shuffles.  The kernel stays HBM
    bound, so the extra MXU passes are free.
    """
    x32 = x_ref[...].astype(jnp.float32)
    sq = x32 * x32
    # S[i, j] = 1 iff lanes i and j belong to the same hidden-sized segment.
    li = jax.lax.broadcasted_iota(jnp.int32, (lane, lane), 0) // hidden
    lj = jax.lax.broadcasted_iota(jnp.int32, (lane, lane), 1) // hidden
    seg = (li == lj).astype(jnp.float32)
    # sq @ S broadcasts each segment's sum of squares to every lane of that
    # segment.  HIGHEST precision keeps full f32 accuracy.
    seg_sum = jnp.dot(sq, seg, preferred_element_type=jnp.float32,
                      precision=jax.lax.Precision.HIGHEST)
    var = seg_sum * (1.0 / hidden)
    normed = x32 * jax.lax.rsqrt(var + eps)
    if x_ref.dtype != jnp.float32:
        normed = normed.astype(x_ref.dtype)
    out = w_ref[...] * normed
    o_ref[...] = out.astype(o_ref.dtype)


# ---------------------------------------------------------------------------
# Tiling / hardware helpers
# ---------------------------------------------------------------------------

def _sublane_multiple(dtype):
    # f32 -> 8, bf16 -> 16, int8/fp8 -> 32 (packed sublanes).
    return max(8, 32 // jnp.dtype(dtype).itemsize)


def _vmem_capacity_bytes():
    try:
        return int(pltpu.get_tpu_info().vmem_capacity_bytes)
    except Exception:  # pragma: no cover - conservative (v7x per-TC) fallback
        return 64 * 1024 * 1024


def _num_tensorcores_per_chip():
    """Best-effort TC-per-chip count (v7x has 2; v5e/v6e have 1)."""
    try:
        kind = jax.devices()[0].device_kind.lower()
        if "v7" in kind or "7x" in kind:
            return 2
    except Exception:  # pragma: no cover
        pass
    return 1


def _pick_tiling(rows, width, x_dtype, out_dtype, w_dtype):
    """Bytes-based row tile + VMEM limit derived from the real working set.

    `width` is the lane extent of the 2D view the kernel sees (== hidden for
    the general path, == 128 for the packed small-hidden path).
    """
    vmem_cap = _vmem_capacity_bytes()

    x_bytes = jnp.dtype(x_dtype).itemsize
    o_bytes = jnp.dtype(out_dtype).itemsize
    w_bytes = jnp.dtype(w_dtype).itemsize

    sub = max(_sublane_multiple(x_dtype), _sublane_multiple(out_dtype))

    # Per-row working set: double-buffered input + output tiles plus ~3
    # simultaneously-live f32 temporaries (x32, sq/normed, promoted product).
    per_row = width * (2 * x_bytes + 2 * o_bytes + 12)

    # 128 MiB parts (v5e/v6e): spend half of VMEM on the pipeline.
    # 64 MiB parts (v7x): keep a third so Mosaic scratch / spills still fit.
    if vmem_cap >= 96 * 1024 * 1024:
        budget = vmem_cap // 2
    else:
        budget = vmem_cap // 3

    # Size by bytes, not row count: ~<= 8 MiB per input DMA buffer keeps the
    # ~0.35us/step overhead invisible and DMAs at the HBM roofline.
    target_in_bytes = 8 * 1024 * 1024
    row_tile = budget // max(per_row, 1)
    row_tile = min(row_tile, max(target_in_bytes // max(width * x_bytes, 1), sub))
    row_tile = max(row_tile, sub)

    if rows <= row_tile:
        row_tile = rows                                   # one full block (legal)
    else:
        row_tile = max((row_tile // sub) * sub, sub)      # sublane aligned

    needed = row_tile * per_row + 4 * width * w_bytes + (128 << 10)
    vmem_limit = max(needed * 5 // 4, 32 * 1024 * 1024)
    vmem_limit = min(vmem_limit, vmem_cap - 16 * 1024 * 1024)  # Mosaic headroom
    vmem_limit = max(vmem_limit, 32 * 1024 * 1024)
    return int(row_tile), int(vmem_limit)


def _single_buffer():
    try:
        return pl.Buffered(1)   # weight index_map is constant across the grid
    except Exception:           # pragma: no cover
        return None


# ---------------------------------------------------------------------------
# pallas_call plumbing
# ---------------------------------------------------------------------------

def _call_rmsnorm_2d(kernel, x2d, w2d, out_dtype, row_tile, vmem_limit,
                     row_semantics, weight_pipeline, donate):
    rows, width = x2d.shape
    grid = (pl.cdiv(rows, row_tile),)
    w_kwargs = {}
    if weight_pipeline is not None:
        w_kwargs["pipeline_mode"] = weight_pipeline
    return pl.pallas_call(
        kernel,
        out_shape=jax.ShapeDtypeStruct((rows, width), out_dtype),
        grid_spec=pltpu.PrefetchScalarGridSpec(
            num_scalar_prefetch=0,
            grid=grid,
            in_specs=[
                pl.BlockSpec((row_tile, width), lambda i: (i, 0)),
                pl.BlockSpec((1, width), lambda i: (0, 0), **w_kwargs),
            ],
            out_specs=pl.BlockSpec((row_tile, width), lambda i: (i, 0)),
        ),
        compiler_params=pltpu.CompilerParams(
            dimension_semantics=(row_semantics,),
            vmem_limit_bytes=vmem_limit,
        ),
        input_output_aliases=({0: 0} if donate else {}),
    )(x2d, w2d)


def _run_with_fallback(kernel, x2d, w2d, out_dtype, row_tile, vmem_limit,
                       preferred_sem, donate):
    """Try the preferred (CORE_PARALLEL + single-buffered weight) config, then
    fall back to the known-good (PARALLEL + default buffering) config."""
    configs = [(preferred_sem, _single_buffer())]
    if preferred_sem is not pltpu.PARALLEL:
        configs.append((pltpu.PARALLEL, _single_buffer()))
    configs.append((pltpu.PARALLEL, None))
    err = None
    for sem, wmode in configs:
        try:
            return _call_rmsnorm_2d(kernel, x2d, w2d, out_dtype, row_tile,
                                    vmem_limit, sem, wmode, donate)
        except Exception as e:  # pragma: no cover - config fallback
            err = e
    raise err


# ---------------------------------------------------------------------------
# Public entry point
# ---------------------------------------------------------------------------

def rmsnorm(hidden_states, weight, eps=1e-5, donate_input=False):
    """RMSNorm over the last axis of `hidden_states`, scaled by `weight`.

    Matches the torch module: x -> f32, var = mean(x^2, -1),
    x *= rsqrt(var + eps), result = weight * x.to(input_dtype).
    """
    orig_shape = hidden_states.shape
    hidden = orig_shape[-1]
    assert weight.shape == (hidden,)

    # torch result dtype: weight * x.to(input_dtype) -> promoted dtype.
    out_dtype = jnp.promote_types(hidden_states.dtype, weight.dtype)

    x2d = hidden_states.reshape(-1, hidden)
    rows = x2d.shape[0]

    # Only alias in-place when the output buffer is bit-compatible with the
    # input (caller must also actually donate the input for XLA to reuse it).
    donate = bool(donate_input) and out_dtype == x2d.dtype

    # On multi-TC chips (v7x) request real cross-core sharding of the row axis.
    preferred_sem = (pltpu.CORE_PARALLEL if _num_tensorcores_per_chip() > 1
                     else pltpu.PARALLEL)

    # ---- small-hidden lane-dense path ------------------------------------
    lane = 128
    if hidden < lane and lane % hidden == 0 and rows % (lane // hidden) == 0:
        k = lane // hidden
        rows_p = rows // k
        xp = x2d.reshape(rows_p, lane)               # free row-major dim merge
        wp = jnp.tile(weight, k).reshape(1, lane)    # weight per lane segment
        row_tile, vmem_limit = _pick_tiling(rows_p, lane, xp.dtype, out_dtype,
                                            weight.dtype)
        kern = functools.partial(_rmsnorm_packed_kernel, eps=eps,
                                 hidden=hidden, lane=lane)
        try:
            outp = _run_with_fallback(kern, xp, wp, out_dtype, row_tile,
                                      vmem_limit, preferred_sem, donate)
            return outp.reshape(orig_shape[:-1] + (hidden,))
        except Exception:  # pragma: no cover - fall back to general path
            pass

    # ---- general path ------------------------------------------------------
    # TODO(synk): hidden < 128 that does not divide 128 (or ragged rows) still
    # emits lane-masked stores here; keep hidden a multiple of 128 in real models.
    w2d = weight.reshape(1, hidden)
    row_tile, vmem_limit = _pick_tiling(rows, hidden, x2d.dtype, out_dtype,
                                        weight.dtype)
    kern = functools.partial(_rmsnorm_kernel, eps=eps)
    out2d = _run_with_fallback(kern, x2d, w2d, out_dtype, row_tile,
                               vmem_limit, preferred_sem, donate)
    return out2d.reshape(orig_shape[:-1] + (hidden,))


# ---------------------------------------------------------------------------
# Self-test
# ---------------------------------------------------------------------------

def _reference(x, weight, eps):
    # Pure-JAX reference of the torch semantics.
    x32 = x.astype(jnp.float32)
    var = jnp.mean(x32 * x32, axis=-1, keepdims=True)
    return weight * (x32 * jax.lax.rsqrt(var + eps)).astype(x.dtype)


if __name__ == "__main__":
    eps = 1e-5
    key = jax.random.PRNGKey(0)
    k1, k2, k3 = jax.random.split(key, 3)

    # Shapes implied by the module: batch=2, seq=8, hidden=32 (packed path).
    batch, seq, hidden = 2, 8, 32
    x = jax.random.normal(k1, (batch, seq, hidden), dtype=jnp.float32)
    weight = jnp.ones((hidden,), dtype=jnp.float32)   # nn.Parameter(torch.ones)

    out = jax.block_until_ready(rmsnorm(x, weight, eps))
    ref = _reference(x, weight, eps)
    assert out.shape == x.shape
    assert out.dtype == ref.dtype
    assert jnp.allclose(out, ref, atol=1e-5, rtol=1e-5)

    # Second small case exercising the general (hidden >= 128) path.
    hidden2 = 256
    x2 = jax.random.normal(k2, (batch, seq, hidden2), dtype=jnp.float32)
    w2 = 1.0 + 0.1 * jax.random.normal(k3, (hidden2,), dtype=jnp.float32)
    out2 = jax.block_until_ready(rmsnorm(x2, w2, eps))
    ref2 = _reference(x2, w2, eps)
    assert out2.shape == x2.shape
    assert out2.dtype == ref2.dtype
    assert jnp.allclose(out2, ref2, atol=1e-5, rtol=1e-5)

    print("KERNEL_OK")
</pallas_src>

<mosaic_0001>
module attributes {stable_mosaic.version = 11 : i64} {
  func.func @_rmsnorm_kernel(%arg0: i32, %arg1: memref<16x32xf32, #tpu.memory_space<vmem>>, %arg2: memref<1x32xf32, #tpu.memory_space<vmem>>, %arg3: memref<16x32xf32, #tpu.memory_space<vmem>>) attributes {dimension_semantics = [#tpu.dimension_semantics<parallel>], iteration_bounds = array<i64: 1>, scalar_prefetch = 0 : i64, scratch_operands = 0 : i64, tpu.core_type = #tpu.core_type<tc>, window_params = [{transform_indices = @transform_0, window_bounds = array<i64: 16, 32>}, {pipeline_mode = #tpu.pipeline_mode<synchronous>, transform_indices = @transform_1, window_bounds = array<i64: 1, 32>}, {transform_indices = @transform_2, window_bounds = array<i64: 16, 32>}]} {
    %c0 = arith.constant 0 : index
    %c0_0 = arith.constant 0 : index
    %0 = vector.load %arg1[%c0, %c0_0] : memref<16x32xf32, #tpu.memory_space<vmem>>, vector<16x32xf32>
    %1 = arith.mulf %0, %0 : vector<16x32xf32>
    %cst = arith.constant dense<0.000000e+00> : vector<16xf32>
    %2 = vector.multi_reduction <add>, %1, %cst [1] : vector<16x32xf32> to vector<16xf32>
    %3 = vector.shape_cast %2 : vector<16xf32> to vector<16x1xf32>
    %cst_1 = arith.constant 3.200000e+01 : f32
    %4 = vector.broadcast %cst_1 : f32 to vector<16x1xf32>
    %5 = arith.divf %3, %4 : vector<16x1xf32>
    %cst_2 = arith.constant 9.99999974E-6 : f32
    %6 = vector.broadcast %cst_2 : f32 to vector<16x1xf32>
    %7 = arith.addf %5, %6 : vector<16x1xf32>
    %8 = math.rsqrt %7 : vector<16x1xf32>
    %9 = vector.broadcast %8 : vector<16x1xf32> to vector<16x32xf32>
    %10 = arith.mulf %0, %9 : vector<16x32xf32>
    %c0_3 = arith.constant 0 : index
    %c0_4 = arith.constant 0 : index
    %11 = vector.load %arg2[%c0_3, %c0_4] : memref<1x32xf32, #tpu.memory_space<vmem>>, vector<1x32xf32>
    %12 = vector.broadcast %11 : vector<1x32xf32> to vector<16x32xf32>
    %13 = arith.mulf %12, %10 : vector<16x32xf32>
    %c0_5 = arith.constant 0 : index
    %c0_6 = arith.constant 0 : index
    %14 = vector.load %arg3[%c0_5, %c0_6] : memref<16x32xf32, #tpu.memory_space<vmem>>, vector<16x32xf32>
    tpu.vector_store %arg3[%c0_5, %c0_6], %13 {strides = array<i32>} : memref<16x32xf32, #tpu.memory_space<vmem>>, vector<16x32xf32>,
    return
  }
  func.func @transform_0(%arg0: i32) -> (i32, i32) {
    %c0_i32 = arith.constant 0 : i32
    %c0_i32_0 = arith.constant 0 : i32
    return %arg0, %c0_i32 : i32, i32
  }
  func.func @transform_1(%arg0: i32) -> (i32, i32) {
    %c0_i32 = arith.constant 0 : i32
    %c0_i32_0 = arith.constant 0 : i32
    %c0_i32_1 = arith.constant 0 : i32
    return %c0_i32, %c0_i32_0 : i32, i32
  }
  func.func @transform_2(%arg0: i32) -> (i32, i32) {
    %c0_i32 = arith.constant 0 : i32
    %c0_i32_0 = arith.constant 0 : i32
    return %arg0, %c0_i32 : i32, i32
  }
}

module attributes {stable_mosaic.version = 11 : i64} {
  func.func @_rmsnorm_kernel(%arg0: i32, %arg1: memref<16x32xf32, #tpu.memory_space<vmem>>, %arg2: memref<1x32xf32, #tpu.memory_space<vmem>>, %arg3: memref<16x32xf32, #tpu.memory_space<vmem>>) attributes {dimension_semantics = [#tpu.dimension_semantics<parallel>], iteration_bounds = array<i64: 1>, scalar_prefetch = 0 : i64, scratch_operands = 0 : i64, tpu.core_type = #tpu.core_type<tc>, window_params = [{transform_indices = @transform_0, window_bounds = array<i64: 16, 32>}, {pipeline_mode = #tpu.pipeline_mode<synchronous>, transform_indices = @transform_1, window_bounds = array<i64: 1, 32>}, {transform_indices = @transform_2, window_bounds = array<i64: 16, 32>}]} {
    %c0 = arith.constant 0 : index
    %c0_0 = arith.constant 0 : index
    %0 = vector.load %arg1[%c0, %c0_0] : memref<16x32xf32, #tpu.memory_space<vmem>>, vector<16x32xf32>
    %1 = arith.mulf %0, %0 : vector<16x32xf32>
    %cst = arith.constant dense<0.000000e+00> : vector<16xf32>
    %2 = vector.multi_reduction <add>, %1, %cst [1] : vector<16x32xf32> to vector<16xf32>
    %3 = vector.shape_cast %2 : vector<16xf32> to vector<16x1xf32>
    %cst_1 = arith.constant 3.200000e+01 : f32
    %4 = vector.broadcast %cst_1 : f32 to vector<16x1xf32>
    %5 = arith.divf %3, %4 : vector<16x1xf32>
    %cst_2 = arith.constant 9.99999974E-6 : f32
    %6 = vector.broadcast %cst_2 : f32 to vector<16x1xf32>
    %7 = arith.addf %5, %6 : vector<16x1xf32>
    %8 = math.rsqrt %7 : vector<16x1xf32>
    %9 = vector.broadcast %8 : vector<16x1xf32> to vector<16x32xf32>
    %10 = arith.mulf %0, %9 : vector<16x32xf32>
    %c0_3 = arith.constant 0 : index
    %c0_4 = arith.constant 0 : index
    %11 = vector.load %arg2[%c0_3, %c0_4] : memref<1x32xf32, #tpu.memory_space<vmem>>, vector<1x32xf32>
    %12 = vector.broadcast %11 : vector<1x32xf32> to vector<16x32xf32>
    %13 = arith.mulf %12, %10 : vector<16x32xf32>
    %c0_5 = arith.constant 0 : index
    %c0_6 = arith.constant 0 : index
    %14 = vector.load %arg3[%c0_5, %c0_6] : memref<16x32xf32, #tpu.memory_space<vmem>>, vector<16x32xf32>
    tpu.vector_store %arg3[%c0_5, %c0_6], %13 {strides = array<i32>} : memref<16x32xf32, #tpu.memory_space<vmem>>, vector<16x32xf32>,
    return
  }
  func.func @transform_0(%arg0: i32) -> (i32, i32) {
    %c0_i32 = arith.constant 0 : i32
    %c0_i32_0 = arith.constant 0 : i32
    return %arg0, %c0_i32 : i32, i32
  }
  func.func @transform_1(%arg0: i32) -> (i32, i32) {
    %c0_i32 = arith.constant 0 : i32
    %c0_i32_0 = arith.constant 0 : i32
    %c0_i32_1 = arith.constant 0 : i32
    return %c0_i32, %c0_i32_0 : i32, i32
  }
  func.func @transform_2(%arg0: i32) -> (i32, i32) {
    %c0_i32 = arith.constant 0 : i32
    %c0_i32_0 = arith.constant 0 : i32
    return %arg0, %c0_i32 : i32, i32
  }
}

</mosaic_0001>

<bundles_post_ra>
// kernel: tpu_custom_call.1
= control target key start
LH: loop header
LB: loop body
LE: loop exit
PB: predicated region body
PF: predicated region fallthrough
CT: control target
= control target key end

     0   :  { %7 = vsyncpa [#allocation3], 0  ;;  %s187_s0 = inlined_call_operand.hbm [shape: f32[16,32], index: 0, kind: input, shape index: {}]   ;;  %s188_s1 = inlined_call_operand.vmem [shape: f32[1,32], index: 1, kind: input, shape index: {}]   ;;  %s189_s2 = inlined_call_operand.hbm [shape: f32[16,32], index: 2, kind: output, shape index: {}]  }
   0x1   :  { %8 = vsyncpa [#allocation4], 0  ;;  %s131_s9 = smov [#allocation2]   ;;  %s83_s13 = scalar_lea.hbm %s187_s0, 256 }
   0x2   :  { %s14_s10 = sshll.u32 %s131_s9, 4  ;;  %p84_p0 = scmp.ne.s32.totalorder %s187_s0, %s83_s13  ;;  %s15_s10 = int_to_ptr.vmem [resolvable:$true] %s14_s10 }
   0x3   :  { %p87_p1 = scmp.lt.u32.totalorder %s83_s13, %s187_s0 }
   0x5   :  { %p89_p2 = pnand %p87_p1, %p84_p0 }
   0x7   :  { %92 = shalt.err (!%p89_p2)
}
   0x8   :  { %s93_s18 = scalar_lea.vmem %s15_s10, 256  ;;  %p98_p4 = scmp.lt.s32.totalorder %s15_s10, %s15_s10 }
   0x9   :  { %p94_p3 = scmp.ne.s32.totalorder %s15_s10, %s93_s18  ;;  %p99_p5 = scmp.lt.s32.totalorder %s93_s18, %s93_s18 }
   0xb   :  { %p100_p6 = por %p99_p5, %p98_p4 }
   0xd   :  { %p101_p7 = pnand %p100_p6, %p94_p3 }
   0xf   :  { %104 = shalt.err (!%p101_p7)
}
  0x10   :  { %s132_s19 = smov 128   ;;  %s133_s20 = smov 8  }
  0x11   :  { %20 = dma.hbm_to_vmem [thread:$0]  %s187_s0, 256, %s15_s10, [#allocation3], %s132_s19, %s132_s19, %s133_s20  }
  0x12   :  { %127 = dma.done.wait [#allocation3], 256  }
  0x13   :  { %128 = vsyncadd [#allocation3], 4294967040  ;;  %v26_v0 = vld [vmem:[#allocation2] sm:$0xff]  ;;  %vm30_vm0 = vcmask 261120   ;;  %v27_v1 = vld [vmem:[#allocation2 + $0x8] sm:$0xff]  ;;  %s134_s24 = smov [#allocation5]  }
  0x14   :  { %v28_v2 = vmul.f32 %v26_v0, %v26_v0  ;;  %v29_v3 = vmul.f32 %v27_v1, %v27_v1  ;;  %v74_v13 = vld [vmem:[%s188_s1] ss:$0 sm:$0xff]  ;;  %s62_s25 = sshll.u32 %s134_s24, 4  ;;  %s63_s25 = int_to_ptr.vmem [resolvable:$true] %s62_s25 }
  0x15   :  { %s105_s26 = scalar_lea.vmem %s63_s25, 256  ;;  %p110_p9 = scmp.lt.s32.totalorder %s63_s25, %s63_s25 }
  0x16   :  { %v31_v4 = vsel %vm30_vm0, %v28_v2, 0.0  ;;  %v34_v5 = vsel %vm30_vm0, %v29_v3, 0.0  ;;  %p106_p8 = scmp.ne.s32.totalorder %s63_s25, %s105_s26  ;;  %p111_p10 = scmp.lt.s32.totalorder %s105_s26, %s105_s26 }
  0x17   :  { %32 = vadd.xlane.f32.xlu0 %v31_v4 }
  0x18   :  { %p112_p11 = por %p111_p10, %p110_p9 }
  0x1a   :  { %p113_p12 = pnand %p112_p11, %p106_p8 }
  0x1b   :  { %35 = vadd.xlane.f32.xlu0 %v34_v5 }
  0xa4   :  { %v33_v6 = vpop.xlane.xlu0 %32 }
  0xa5   :  { %v38_v7 = vmul.f32 0.03125, %v33_v6 }
  0xa7   :  { %v40_v8 = vadd.f32 1e-05, %v38_v7 }
  0xa8   :  { %v36_v9 = vpop.xlane.xlu0 %35 }
  0xa9   :  { %79 = vrsqrt.f32 %v40_v8  ;;  %v39_v10 = vmul.f32 0.03125, %v36_v9 }
  0xab   :  { %v41_v11 = vadd.f32 1e-05, %v39_v10 }
  0xad   :  { %81 = vrsqrt.f32 %v41_v11 }
  0xb3   :  { %v80_v12 = vpop.eup %79 }
  0xb4   :  { %v44_v14 = vmul.f32 %v80_v12, %v26_v0 }
  0xb6   :  { %v53_v15 = vmul.f32 %v74_v13, %v44_v14 }
  0xb7   :  { %v82_v16 = vpop.eup %81 }
  0xb8   :  { %v45_v17 = vmul.f32 %v82_v16, %v27_v1  ;;  %55 = vst.msk [vmem:[#allocation5] sm:$0xff] %vm30_vm0, %v53_v15 }
  0xba   :  { %v54_v18 = vmul.f32 %v74_v13, %v45_v17 }
  0xbc   :  { %56 = vst.msk [vmem:[#allocation5 + $0x8] sm:$0xff] %vm30_vm0, %v54_v18 }
  0xbd   :  { %116 = shalt.err (!%p113_p12)
}
  0xbe   :  { %s117_s28 = scalar_lea.hbm %s189_s2, 256 }
  0xbf   :  { %p118_p13 = scmp.ne.s32.totalorder %s189_s2, %s117_s28  ;;  %p121_p0 = scmp.lt.u32.totalorder %s117_s28, %s189_s2 }
  0xc1   :  { %p123_p1 = pnand %p121_p0, %p118_p13 }
  0xc3   :  { %126 = shalt.err (!%p123_p1)
}
  0xc4   :  { %68 = dma.vmem_to_hbm [thread:$0]  %s63_s25, 256, %s189_s2, [#allocation4], %s132_s19, %s132_s19, %s133_s20  }
  0xc5   :  { %129 = dma.done.wait [#allocation4], 256  }
  0xc6   :  { %130 = vsyncadd [#allocation4], 4294967040 }
  0xc7   :  { %72 = vsyncpa [#allocation3], 1 }
  0xc8   :  { %73 = vsyncpa [#allocation4], 1 }

// kernel: tpu_custom_call.1
= control target key start
LH: loop header
LB: loop body
LE: loop exit
PB: predicated region body
PF: predicated region fallthrough
CT: control target
= control target key end

     0   :  { %7 = vsyncpa [#allocation3], 0  ;;  %s187_s0 = inlined_call_operand.hbm [shape: f32[16,32], index: 0, kind: input, shape index: {}]   ;;  %s188_s1 = inlined_call_operand.vmem [shape: f32[1,32], index: 1, kind: input, shape index: {}]   ;;  %s189_s2 = inlined_call_operand.hbm [shape: f32[16,32], index: 2, kind: output, shape index: {}]  }
   0x1   :  { %8 = vsyncpa [#allocation4], 0  ;;  %s131_s9 = smov [#allocation2]   ;;  %s83_s13 = scalar_lea.hbm %s187_s0, 256 }
   0x2   :  { %s14_s10 = sshll.u32 %s131_s9, 4  ;;  %p84_p0 = scmp.ne.s32.totalorder %s187_s0, %s83_s13  ;;  %s15_s10 = int_to_ptr.vmem [resolvable:$true] %s14_s10 }
   0x3   :  { %p87_p1 = scmp.lt.u32.totalorder %s83_s13, %s187_s0 }
   0x5   :  { %p89_p2 = pnand %p87_p1, %p84_p0 }
   0x7   :  { %92 = shalt.err (!%p89_p2)
}
   0x8   :  { %s93_s18 = scalar_lea.vmem %s15_s10, 256  ;;  %p98_p4 = scmp.lt.s32.totalorder %s15_s10, %s15_s10 }
   0x9   :  { %p94_p3 = scmp.ne.s32.totalorder %s15_s10, %s93_s18  ;;  %p99_p5 = scmp.lt.s32.totalorder %s93_s18, %s93_s18 }
   0xb   :  { %p100_p6 = por %p99_p5, %p98_p4 }
   0xd   :  { %p101_p7 = pnand %p100_p6, %p94_p3 }
   0xf   :  { %104 = shalt.err (!%p101_p7)
}
  0x10   :  { %s132_s19 = smov 128   ;;  %s133_s20 = smov 8  }
  0x11   :  { %20 = dma.hbm_to_vmem [thread:$0]  %s187_s0, 256, %s15_s10, [#allocation3], %s132_s19, %s132_s19, %s133_s20  }
  0x12   :  { %127 = dma.done.wait [#allocation3], 256  }
  0x13   :  { %128 = vsyncadd [#allocation3], 4294967040  ;;  %v26_v0 = vld [vmem:[#allocation2] sm:$0xff]  ;;  %vm30_vm0 = vcmask 261120   ;;  %v27_v1 = vld [vmem:[#allocation2 + $0x8] sm:$0xff]  ;;  %s134_s24 = smov [#allocation5]  }
  0x14   :  { %v28_v2 = vmul.f32 %v26_v0, %v26_v0  ;;  %v29_v3 = vmul.f32 %v27_v1, %v27_v1  ;;  %v74_v13 = vld [vmem:[%s188_s1] ss:$0 sm:$0xff]  ;;  %s62_s25 = sshll.u32 %s134_s24, 4  ;;  %s63_s25 = int_to_ptr.vmem [resolvable:$true] %s62_s25 }
  0x15   :  { %s105_s26 = scalar_lea.vmem %s63_s25, 256  ;;  %p110_p9 = scmp.lt.s32.totalorder %s63_s25, %s63_s25 }
  0x16   :  { %v31_v4 = vsel %vm30_vm0, %v28_v2, 0.0  ;;  %v34_v5 = vsel %vm30_vm0, %v29_v3, 0.0  ;;  %p106_p8 = scmp.ne.s32.totalorder %s63_s25, %s105_s26  ;;  %p111_p10 = scmp.lt.s32.totalorder %s105_s26, %s105_s26 }
  0x17   :  { %32 = vadd.xlane.f32.xlu0 %v31_v4 }
  0x18   :  { %p112_p11 = por %p111_p10, %p110_p9 }
  0x1a   :  { %p113_p12 = pnand %p112_p11, %p106_p8 }
  0x1b   :  { %35 = vadd.xlane.f32.xlu0 %v34_v5 }
  0xa4   :  { %v33_v6 = vpop.xlane.xlu0 %32 }
  0xa5   :  { %v38_v7 = vmul.f32 0.03125, %v33_v6 }
  0xa7   :  { %v40_v8 = vadd.f32 1e-05, %v38_v7 }
  0xa8   :  { %v36_v9 = vpop.xlane.xlu0 %35 }
  0xa9   :  { %79 = vrsqrt.f32 %v40_v8  ;;  %v39_v10 = vmul.f32 0.03125, %v36_v9 }
  0xab   :  { %v41_v11 = vadd.f32 1e-05, %v39_v10 }
  0xad   :  { %81 = vrsqrt.f32 %v41_v11 }
  0xb3   :  { %v80_v12 = vpop.eup %79 }
  0xb4   :  { %v44_v14 = vmul.f32 %v80_v12, %v26_v0 }
  0xb6   :  { %v53_v15 = vmul.f32 %v74_v13, %v44_v14 }
  0xb7   :  { %v82_v16 = vpop.eup %81 }
  0xb8   :  { %v45_v17 = vmul.f32 %v82_v16, %v27_v1  ;;  %55 = vst.msk [vmem:[#allocation5] sm:$0xff] %vm30_vm0, %v53_v15 }
  0xba   :  { %v54_v18 = vmul.f32 %v74_v13, %v45_v17 }
  0xbc   :  { %56 = vst.msk [vmem:[#allocation5 + $0x8] sm:$0xff] %vm30_vm0, %v54_v18 }
  0xbd   :  { %116 = shalt.err (!%p113_p12)
}
  0xbe   :  { %s117_s28 = scalar_lea.hbm %s189_s2, 256 }
  0xbf   :  { %p118_p13 = scmp.ne.s32.totalorder %s189_s2, %s117_s28  ;;  %p121_p0 = scmp.lt.u32.totalorder %s117_s28, %s189_s2 }
  0xc1   :  { %p123_p1 = pnand %p121_p0, %p118_p13 }
  0xc3   :  { %126 = shalt.err (!%p123_p1)
}
  0xc4   :  { %68 = dma.vmem_to_hbm [thread:$0]  %s63_s25, 256, %s189_s2, [#allocation4], %s132_s19, %s132_s19, %s133_s20  }
  0xc5   :  { %129 = dma.done.wait [#allocation4], 256  }
  0xc6   :  { %130 = vsyncadd [#allocation4], 4294967040 }
  0xc7   :  { %72 = vsyncpa [#allocation3], 1 }
  0xc8   :  { %73 = vsyncpa [#allocation4], 1 }

</bundles_post_ra>
